<compile_context>
chip_gen: v7x
topology: tpu7x:2x2x1
jax: 0.10.0
libtpu: 0.0.40
codegen_flags: <defaults>
</compile_context>

<pallas_src>
import functools

import jax
import jax.numpy as jnp
from jax.experimental import pallas as pl
from jax.experimental.pallas import tpu as pltpu


def make_neumf_kernel(num_hidden_layers):
    """Kernel for `num_hidden_layers` MLP_layers entries (each + ReLU).

    Ref order (all 2-D, features on sublanes / batch tile on lanes):
      gmf_u [L, TB], gmf_i [L, TB], mlp_u [L, TB], mlp_i [L, TB],
      w0_u [H0, L], w0_i [H0, L], b0 [H0, 1],             # layer 0, concat split
      (w_k [Hk, Hk-1], b_k [Hk, 1]) * (num_hidden_layers - 1),
      w_mlp_out [L, Hlast], b_mlp_out [L, 1],             # MLP_output (no act)
      w_gmf_col [L, 1], w_mlp_col [L, 1], lin_b [1, 1],   # final linear, split
      out [1, TB]
    """

    def kernel(gmf_u_ref, gmf_i_ref, mlp_u_ref, mlp_i_ref,
               w0_u_ref, w0_i_ref, b0_ref, *refs):
        out_ref = refs[-1]
        lin_b_ref = refs[-2]
        w_mlp_col_ref = refs[-3]
        w_gmf_col_ref = refs[-4]
        b_mlp_out_ref = refs[-5]
        w_mlp_out_ref = refs[-6]
        hidden_wb = refs[:-6]

        # GMF branch: elementwise product (VPU).
        gmf_vec = gmf_u_ref[...] * gmf_i_ref[...]                        # [L, TB]

        # MLP layer 0: concat(mlp_u, mlp_i) expressed as two matmuls with the
        # split weight halves -> no lane-axis concatenation / relayout.
        x = jnp.dot(w0_u_ref[...], mlp_u_ref[...],
                    preferred_element_type=jnp.float32)
        x = x + jnp.dot(w0_i_ref[...], mlp_i_ref[...],
                        preferred_element_type=jnp.float32)
        x = jnp.maximum(x + b0_ref[...], 0.0)                            # [H0, TB]

        # Remaining MLP_layers (Linear + ReLU each).
        for l in range(num_hidden_layers - 1):
            w = hidden_wb[2 * l][...]
            b = hidden_wb[2 * l + 1][...]
            x = jnp.dot(w, x, preferred_element_type=jnp.float32) + b
            x = jnp.maximum(x, 0.0)

        # MLP_output linear (no activation).
        mlp_vec = jnp.dot(w_mlp_out_ref[...], x,
                          preferred_element_type=jnp.float32)
        mlp_vec = mlp_vec + b_mlp_out_ref[...]                           # [L, TB]

        # Final Linear(2L -> 1) + sigmoid: VPU multiply + sublane (XLU)
        # reduction instead of a 1-column MXU matmul; lane-dense [1, TB] store.
        z = gmf_vec * w_gmf_col_ref[...] + mlp_vec * w_mlp_col_ref[...]  # [L, TB]
        logits = jnp.sum(z, axis=0, keepdims=True) + lin_b_ref[...]      # [1, TB]
        out_ref[...] = jax.nn.sigmoid(logits)

    return kernel


@functools.partial(jax.jit, static_argnames=("tb",))
def neumf_forward(params, user_indexes, item_indexes, *, tb=256):
    """NeuMF forward. Embedding gathers in plain JAX, dense path in Pallas."""
    latent_dim = params["gmf_emb_user"].shape[1]
    output_dim = params["lin_w"].shape[0]
    assert output_dim == 1, "kernel is specialized to output_dim == 1"
    batch = user_indexes.shape[0]

    # Pad the batch to a multiple of the lane-tile size (index 0 is a valid
    # table row; padded rows compute valid-but-unused values and are sliced
    # off afterwards, so no in-kernel masking is needed).
    num_tiles = pl.cdiv(batch, tb)
    padded = num_tiles * tb
    if padded != batch:
        pad = padded - batch
        user_indexes = jnp.pad(user_indexes, (0, pad))
        item_indexes = jnp.pad(item_indexes, (0, pad))

    # Embedding lookups (glue), presented transposed: [latent_dim, padded] so
    # the batch sits on the lane axis inside the kernel.
    # TODO(synk): fuse the four gathers into the kernel with per-row manual
    # DMA (memory_space=pl.ANY + make_async_copy) to drop the XLA gather ops.
    gmf_u = jnp.take(params["gmf_emb_user"], user_indexes, axis=0).T
    gmf_i = jnp.take(params["gmf_emb_item"], item_indexes, axis=0).T
    mlp_u = jnp.take(params["mlp_emb_user"], user_indexes, axis=0).T
    mlp_i = jnp.take(params["mlp_emb_item"], item_indexes, axis=0).T

    # Weights are stored in PyTorch layout [out, in]; split the two "concat"
    # weights so the kernel never concatenates along the feature axis.
    w0 = params["mlp_ws"][0]                      # [H0, 2L]
    w0_u, w0_i = w0[:, :latent_dim], w0[:, latent_dim:]
    lin_w = params["lin_w"]                       # [1, 2L]
    w_gmf_col = lin_w[:, :latent_dim].T           # [L, 1]
    w_mlp_col = lin_w[:, latent_dim:].T           # [L, 1]

    num_hidden_layers = len(params["mlp_ws"])
    kernel = make_neumf_kernel(num_hidden_layers)

    acts = [gmf_u, gmf_i, mlp_u, mlp_i]
    weights = [w0_u, w0_i, params["mlp_bs"][0]]
    for w, b in zip(params["mlp_ws"][1:], params["mlp_bs"][1:]):
        weights += [w, b]
    weights += [params["mlp_out_w"], params["mlp_out_b"]]
    weights += [w_gmf_col, w_mlp_col, params["lin_b"]]

    # Activations stream per batch tile (double-buffered by the pipeline);
    # weights use a constant index_map so they stay VMEM-resident and are not
    # re-DMA'd per grid step.
    act_spec = pl.BlockSpec((latent_dim, tb), lambda i: (0, i))
    in_specs = [act_spec] * 4 + [
        pl.BlockSpec(w.shape, lambda i: (0, 0)) for w in weights
    ]
    out_spec = pl.BlockSpec((1, tb), lambda i: (0, i))

    out = pl.pallas_call(
        kernel,
        out_shape=jax.ShapeDtypeStruct((1, padded), jnp.float32),
        grid=(num_tiles,),
        in_specs=in_specs,
        out_specs=out_spec,
        compiler_params=pltpu.CompilerParams(
            dimension_semantics=("parallel",),
        ),
    )(*acts, *weights)

    # Back to the module's (batch, output_dim) layout.
    return out[0, :batch][:, None]


def init_params(key, num_users, num_items, latent_dim, layers, output_dim=1):
    """Deterministic synthetic init (PyTorch layout: W=[out,in], b=[out,1])."""
    assert output_dim == 1
    keys = jax.random.split(key, 4 + 2 * (len(layers) + 2))
    k = iter(keys)

    def unif(rng, shape, scale):
        return jax.random.uniform(rng, shape, jnp.float32, -scale, scale)

    params = {
        "gmf_emb_user": jax.random.normal(next(k), (num_users, latent_dim), jnp.float32) * 0.1,
        "gmf_emb_item": jax.random.normal(next(k), (num_items, latent_dim), jnp.float32) * 0.1,
        "mlp_emb_user": jax.random.normal(next(k), (num_users, latent_dim), jnp.float32) * 0.1,
        "mlp_emb_item": jax.random.normal(next(k), (num_items, latent_dim), jnp.float32) * 0.1,
    }

    # MLP_layers: Linear(2*latent_dim, layers[0]), then Linear(layers[i-1], layers[i]).
    in_sizes = [2 * latent_dim] + list(layers[:-1])
    out_sizes = list(layers)
    mlp_ws, mlp_bs = [], []
    for in_s, out_s in zip(in_sizes, out_sizes):
        scale = 1.0 / (in_s ** 0.5)
        mlp_ws.append(unif(next(k), (out_s, in_s), scale))
        mlp_bs.append(unif(next(k), (out_s, 1), scale))
    params["mlp_ws"] = mlp_ws
    params["mlp_bs"] = mlp_bs

    scale = 1.0 / (layers[-1] ** 0.5)
    params["mlp_out_w"] = unif(next(k), (latent_dim, layers[-1]), scale)
    params["mlp_out_b"] = unif(next(k), (latent_dim, 1), scale)

    scale = 1.0 / ((2 * latent_dim) ** 0.5)
    params["lin_w"] = unif(next(k), (output_dim, 2 * latent_dim), scale)
    params["lin_b"] = unif(next(k), (output_dim, 1), scale)
    return params


def neumf_reference(params, user_indexes, item_indexes):
    """Pure-JAX reference for correctness checking."""
    gmf_u = jnp.take(params["gmf_emb_user"], user_indexes, axis=0)
    gmf_i = jnp.take(params["gmf_emb_item"], item_indexes, axis=0)
    mlp_u = jnp.take(params["mlp_emb_user"], user_indexes, axis=0)
    mlp_i = jnp.take(params["mlp_emb_item"], item_indexes, axis=0)

    gmf_vec = gmf_u * gmf_i
    x = jnp.concatenate([mlp_u, mlp_i], axis=-1)
    for w, b in zip(params["mlp_ws"], params["mlp_bs"]):
        x = jnp.maximum(x @ w.T + b[:, 0], 0.0)
    mlp_vec = x @ params["mlp_out_w"].T + params["mlp_out_b"][:, 0]
    vector = jnp.concatenate([gmf_vec, mlp_vec], axis=-1)
    return jax.nn.sigmoid(vector @ params["lin_w"].T + params["lin_b"][:, 0])


if __name__ == "__main__":
    num_users = 64
    num_items = 128
    latent_dim = 16
    layers = [32, 16, 8]
    output_dim = 1
    batch = 200   # non-multiple of the tile -> exercises padding + 2 grid steps
    tb = 128

    key = jax.random.PRNGKey(0)
    kp, ku, ki = jax.random.split(key, 3)

    params = init_params(kp, num_users, num_items, latent_dim, layers, output_dim)
    user_idx = jax.random.randint(ku, (batch,), 0, num_users, dtype=jnp.int32)
    item_idx = jax.random.randint(ki, (batch,), 0, num_items, dtype=jnp.int32)

    out = jax.block_until_ready(neumf_forward(params, user_idx, item_idx, tb=tb))
    ref = jax.block_until_ready(neumf_reference(params, user_idx, item_idx))

    assert out.shape == (batch, output_dim), out.shape
    assert jnp.allclose(out, ref, atol=1e-5, rtol=1e-5), (out, ref)
    print("KERNEL_OK")
</pallas_src>

<mosaic_0001>
module attributes {stable_mosaic.version = 11 : i64} {
  func.func @kernel(%arg0: i32, %arg1: memref<16x128xf32, #tpu.memory_space<vmem>>, %arg2: memref<16x128xf32, #tpu.memory_space<vmem>>, %arg3: memref<16x128xf32, #tpu.memory_space<vmem>>, %arg4: memref<16x128xf32, #tpu.memory_space<vmem>>, %arg5: memref<32x16xf32, #tpu.memory_space<vmem>>, %arg6: memref<32x16xf32, #tpu.memory_space<vmem>>, %arg7: memref<32x1xf32, #tpu.memory_space<vmem>>, %arg8: memref<16x32xf32, #tpu.memory_space<vmem>>, %arg9: memref<16x1xf32, #tpu.memory_space<vmem>>, %arg10: memref<8x16xf32, #tpu.memory_space<vmem>>, %arg11: memref<8x1xf32, #tpu.memory_space<vmem>>, %arg12: memref<16x8xf32, #tpu.memory_space<vmem>>, %arg13: memref<16x1xf32, #tpu.memory_space<vmem>>, %arg14: memref<16x1xf32, #tpu.memory_space<vmem>>, %arg15: memref<16x1xf32, #tpu.memory_space<vmem>>, %arg16: memref<1x1xf32, #tpu.memory_space<vmem>>, %arg17: memref<1x128xf32, #tpu.memory_space<vmem>>) attributes {dimension_semantics = [#tpu.dimension_semantics<parallel>], iteration_bounds = array<i64: 2>, scalar_prefetch = 0 : i64, scratch_operands = 0 : i64, tpu.core_type = #tpu.core_type<tc>, window_params = [{transform_indices = @transform_0, window_bounds = array<i64: 16, 128>}, {transform_indices = @transform_1, window_bounds = array<i64: 16, 128>}, {transform_indices = @transform_2, window_bounds = array<i64: 16, 128>}, {transform_indices = @transform_3, window_bounds = array<i64: 16, 128>}, {pipeline_mode = #tpu.pipeline_mode<synchronous>, transform_indices = @transform_4, window_bounds = array<i64: 32, 16>}, {pipeline_mode = #tpu.pipeline_mode<synchronous>, transform_indices = @transform_5, window_bounds = array<i64: 32, 16>}, {pipeline_mode = #tpu.pipeline_mode<synchronous>, transform_indices = @transform_6, window_bounds = array<i64: 32, 1>}, {pipeline_mode = #tpu.pipeline_mode<synchronous>, transform_indices = @transform_7, window_bounds = array<i64: 16, 32>}, {pipeline_mode = #tpu.pipeline_mode<synchronous>, transform_indices = @transform_8, window_bounds = array<i64: 16, 1>}, {pipeline_mode = #tpu.pipeline_mode<synchronous>, transform_indices = @transform_9, window_bounds = array<i64: 8, 16>}, {pipeline_mode = #tpu.pipeline_mode<synchronous>, transform_indices = @transform_10, window_bounds = array<i64: 8, 1>}, {pipeline_mode = #tpu.pipeline_mode<synchronous>, transform_indices = @transform_11, window_bounds = array<i64: 16, 8>}, {pipeline_mode = #tpu.pipeline_mode<synchronous>, transform_indices = @transform_12, window_bounds = array<i64: 16, 1>}, {pipeline_mode = #tpu.pipeline_mode<synchronous>, transform_indices = @transform_13, window_bounds = array<i64: 16, 1>}, {pipeline_mode = #tpu.pipeline_mode<synchronous>, transform_indices = @transform_14, window_bounds = array<i64: 16, 1>}, {pipeline_mode = #tpu.pipeline_mode<synchronous>, transform_indices = @transform_15, window_bounds = array<i64: 1, 1>}, {transform_indices = @transform_16, window_bounds = array<i64: 1, 128>}]} {
    %c0 = arith.constant 0 : index
    %c0_0 = arith.constant 0 : index
    %0 = vector.load %arg1[%c0, %c0_0] : memref<16x128xf32, #tpu.memory_space<vmem>>, vector<16x128xf32>
    %c0_1 = arith.constant 0 : index
    %c0_2 = arith.constant 0 : index
    %1 = vector.load %arg2[%c0_1, %c0_2] : memref<16x128xf32, #tpu.memory_space<vmem>>, vector<16x128xf32>
    %2 = arith.mulf %0, %1 : vector<16x128xf32>
    %c0_3 = arith.constant 0 : index
    %c0_4 = arith.constant 0 : index
    %3 = vector.load %arg5[%c0_3, %c0_4] : memref<32x16xf32, #tpu.memory_space<vmem>>, vector<32x16xf32>
    %c0_5 = arith.constant 0 : index
    %c0_6 = arith.constant 0 : index
    %4 = vector.load %arg3[%c0_5, %c0_6] : memref<16x128xf32, #tpu.memory_space<vmem>>, vector<16x128xf32>
    %cst = arith.constant dense<0.000000e+00> : vector<32x128xf32>
    %5 = tpu.matmul %3, %4, %cst {dimension_numbers = #tpu.dot_dimension_numbers<[1], [0], [0], [1], [0, 0, 1, 1], [], []>} : vector<32x16xf32>, vector<16x128xf32>, vector<32x128xf32> -> vector<32x128xf32>
    %c0_7 = arith.constant 0 : index
    %c0_8 = arith.constant 0 : index
    %6 = vector.load %arg6[%c0_7, %c0_8] : memref<32x16xf32, #tpu.memory_space<vmem>>, vector<32x16xf32>
    %c0_9 = arith.constant 0 : index
    %c0_10 = arith.constant 0 : index
    %7 = vector.load %arg4[%c0_9, %c0_10] : memref<16x128xf32, #tpu.memory_space<vmem>>, vector<16x128xf32>
    %cst_11 = arith.constant dense<0.000000e+00> : vector<32x128xf32>
    %8 = tpu.matmul %6, %7, %cst_11 {dimension_numbers = #tpu.dot_dimension_numbers<[1], [0], [0], [1], [0, 0, 1, 1], [], []>} : vector<32x16xf32>, vector<16x128xf32>, vector<32x128xf32> -> vector<32x128xf32>
    %9 = arith.addf %5, %8 : vector<32x128xf32>
    %c0_12 = arith.constant 0 : index
    %c0_13 = arith.constant 0 : index
    %10 = vector.load %arg7[%c0_12, %c0_13] : memref<32x1xf32, #tpu.memory_space<vmem>>, vector<32x1xf32>
    %11 = vector.broadcast %10 : vector<32x1xf32> to vector<32x128xf32>
    %12 = arith.addf %9, %11 : vector<32x128xf32>
    %cst_14 = arith.constant 0.000000e+00 : f32
    %13 = vector.broadcast %cst_14 : f32 to vector<32x128xf32>
    %14 = arith.maximumf %12, %13 : vector<32x128xf32>
    %c0_15 = arith.constant 0 : index
    %c0_16 = arith.constant 0 : index
    %15 = vector.load %arg8[%c0_15, %c0_16] : memref<16x32xf32, #tpu.memory_space<vmem>>, vector<16x32xf32>
    %c0_17 = arith.constant 0 : index
    %c0_18 = arith.constant 0 : index
    %16 = vector.load %arg9[%c0_17, %c0_18] : memref<16x1xf32, #tpu.memory_space<vmem>>, vector<16x1xf32>
    %cst_19 = arith.constant dense<0.000000e+00> : vector<16x128xf32>
    %17 = tpu.matmul %15, %14, %cst_19 {dimension_numbers = #tpu.dot_dimension_numbers<[1], [0], [0], [1], [0, 0, 1, 1], [], []>} : vector<16x32xf32>, vector<32x128xf32>, vector<16x128xf32> -> vector<16x128xf32>
    %18 = vector.broadcast %16 : vector<16x1xf32> to vector<16x128xf32>
    %19 = arith.addf %17, %18 : vector<16x128xf32>
    %cst_20 = arith.constant 0.000000e+00 : f32
    %20 = vector.broadcast %cst_20 : f32 to vector<16x128xf32>
    %21 = arith.maximumf %19, %20 : vector<16x128xf32>
    %c0_21 = arith.constant 0 : index
    %c0_22 = arith.constant 0 : index
    %22 = vector.load %arg10[%c0_21, %c0_22] : memref<8x16xf32, #tpu.memory_space<vmem>>, vector<8x16xf32>
    %c0_23 = arith.constant 0 : index
    %c0_24 = arith.constant 0 : index
    %23 = vector.load %arg11[%c0_23, %c0_24] : memref<8x1xf32, #tpu.memory_space<vmem>>, vector<8x1xf32>
    %cst_25 = arith.constant dense<0.000000e+00> : vector<8x128xf32>
    %24 = tpu.matmul %22, %21, %cst_25 {dimension_numbers = #tpu.dot_dimension_numbers<[1], [0], [0], [1], [0, 0, 1, 1], [], []>} : vector<8x16xf32>, vector<16x128xf32>, vector<8x128xf32> -> vector<8x128xf32>
    %25 = vector.broadcast %23 : vector<8x1xf32> to vector<8x128xf32>
    %26 = arith.addf %24, %25 : vector<8x128xf32>
    %cst_26 = arith.constant 0.000000e+00 : f32
    %27 = vector.broadcast %cst_26 : f32 to vector<8x128xf32>
    %28 = arith.maximumf %26, %27 : vector<8x128xf32>
    %c0_27 = arith.constant 0 : index
    %c0_28 = arith.constant 0 : index
    %29 = vector.load %arg12[%c0_27, %c0_28] : memref<16x8xf32, #tpu.memory_space<vmem>>, vector<16x8xf32>
    %cst_29 = arith.constant dense<0.000000e+00> : vector<16x128xf32>
    %30 = tpu.matmul %29, %28, %cst_29 {dimension_numbers = #tpu.dot_dimension_numbers<[1], [0], [0], [1], [0, 0, 1, 1], [], []>} : vector<16x8xf32>, vector<8x128xf32>, vector<16x128xf32> -> vector<16x128xf32>
    %c0_30 = arith.constant 0 : index
    %c0_31 = arith.constant 0 : index
    %31 = vector.load %arg13[%c0_30, %c0_31] : memref<16x1xf32, #tpu.memory_space<vmem>>, vector<16x1xf32>
    %32 = vector.broadcast %31 : vector<16x1xf32> to vector<16x128xf32>
    %33 = arith.addf %30, %32 : vector<16x128xf32>
    %c0_32 = arith.constant 0 : index
    %c0_33 = arith.constant 0 : index
    %34 = vector.load %arg14[%c0_32, %c0_33] : memref<16x1xf32, #tpu.memory_space<vmem>>, vector<16x1xf32>
    %35 = vector.broadcast %34 : vector<16x1xf32> to vector<16x128xf32>
    %36 = arith.mulf %2, %35 : vector<16x128xf32>
    %c0_34 = arith.constant 0 : index
    %c0_35 = arith.constant 0 : index
    %37 = vector.load %arg15[%c0_34, %c0_35] : memref<16x1xf32, #tpu.memory_space<vmem>>, vector<16x1xf32>
    %38 = vector.broadcast %37 : vector<16x1xf32> to vector<16x128xf32>
    %39 = arith.mulf %33, %38 : vector<16x128xf32>
    %40 = arith.addf %36, %39 : vector<16x128xf32>
    %cst_36 = arith.constant dense<0.000000e+00> : vector<128xf32>
    %41 = vector.multi_reduction <add>, %40, %cst_36 [0] : vector<16x128xf32> to vector<128xf32>
    %42 = vector.shape_cast %41 : vector<128xf32> to vector<1x128xf32>
    %c0_37 = arith.constant 0 : index
    %c0_38 = arith.constant 0 : index
    %43 = vector.load %arg16[%c0_37, %c0_38] : memref<1x1xf32, #tpu.memory_space<vmem>>, vector<1x1xf32>
    %44 = vector.broadcast %43 : vector<1x1xf32> to vector<1x128xf32>
    %45 = arith.addf %42, %44 : vector<1x128xf32>
    %46 = arith.negf %45 : vector<1x128xf32>
    %47 = math.exp %46 : vector<1x128xf32>
    %cst_39 = arith.constant 1.000000e+00 : f32
    %48 = vector.broadcast %cst_39 : f32 to vector<1x128xf32>
    %49 = arith.addf %48, %47 : vector<1x128xf32>
    %50 = arith.divf %48, %49 : vector<1x128xf32>
    %c0_40 = arith.constant 0 : index
    %c0_41 = arith.constant 0 : index
    %51 = vector.load %arg17[%c0_40, %c0_41] : memref<1x128xf32, #tpu.memory_space<vmem>>, vector<1x128xf32>
    tpu.vector_store %arg17[%c0_40, %c0_41], %50 {strides = array<i32>} : memref<1x128xf32, #tpu.memory_space<vmem>>, vector<1x128xf32>,
    return
  }
  func.func @transform_0(%arg0: i32) -> (i32, i32) {
    %c0_i32 = arith.constant 0 : i32
    %c0_i32_0 = arith.constant 0 : i32
    return %c0_i32, %arg0 : i32, i32
  }
  func.func @transform_1(%arg0: i32) -> (i32, i32) {
    %c0_i32 = arith.constant 0 : i32
    %c0_i32_0 = arith.constant 0 : i32
    return %c0_i32, %arg0 : i32, i32
  }
  func.func @transform_2(%arg0: i32) -> (i32, i32) {
    %c0_i32 = arith.constant 0 : i32
    %c0_i32_0 = arith.constant 0 : i32
    return %c0_i32, %arg0 : i32, i32
  }
  func.func @transform_3(%arg0: i32) -> (i32, i32) {
    %c0_i32 = arith.constant 0 : i32
    %c0_i32_0 = arith.constant 0 : i32
    return %c0_i32, %arg0 : i32, i32
  }
  func.func @transform_4(%arg0: i32) -> (i32, i32) {
    %c0_i32 = arith.constant 0 : i32
    %c0_i32_0 = arith.constant 0 : i32
    %c0_i32_1 = arith.constant 0 : i32
    return %c0_i32, %c0_i32_0 : i32, i32
  }
  func.func @transform_5(%arg0: i32) -> (i32, i32) {
    %c0_i32 = arith.constant 0 : i32
    %c0_i32_0 = arith.constant 0 : i32
    %c0_i32_1 = arith.constant 0 : i32
    return %c0_i32, %c0_i32_0 : i32, i32
  }
  func.func @transform_6(%arg0: i32) -> (i32, i32) {
    %c0_i32 = arith.constant 0 : i32
    %c0_i32_0 = arith.constant 0 : i32
    %c0_i32_1 = arith.constant 0 : i32
    return %c0_i32, %c0_i32_0 : i32, i32
  }
  func.func @transform_7(%arg0: i32) -> (i32, i32) {
    %c0_i32 = arith.constant 0 : i32
    %c0_i32_0 = arith.constant 0 : i32
    %c0_i32_1 = arith.constant 0 : i32
    return %c0_i32, %c0_i32_0 : i32, i32
  }
  func.func @transform_8(%arg0: i32) -> (i32, i32) {
    %c0_i32 = arith.constant 0 : i32
    %c0_i32_0 = arith.constant 0 : i32
    %c0_i32_1 = arith.constant 0 : i32
    return %c0_i32, %c0_i32_0 : i32, i32
  }
  func.func @transform_9(%arg0: i32) -> (i32, i32) {
    %c0_i32 = arith.constant 0 : i32
    %c0_i32_0 = arith.constant 0 : i32
    %c0_i32_1 = arith.constant 0 : i32
    return %c0_i32, %c0_i32_0 : i32, i32
  }
  func.func @transform_10(%arg0: i32) -> (i32, i32) {
    %c0_i32 = arith.constant 0 : i32
    %c0_i32_0 = arith.constant 0 : i32
    %c0_i32_1 = arith.constant 0 : i32
    return %c0_i32, %c0_i32_0 : i32, i32
  }
  func.func @transform_11(%arg0: i32) -> (i32, i32) {
    %c0_i32 = arith.constant 0 : i32
    %c0_i32_0 = arith.constant 0 : i32
    %c0_i32_1 = arith.constant 0 : i32
    return %c0_i32, %c0_i32_0 : i32, i32
  }
  func.func @transform_12(%arg0: i32) -> (i32, i32) {
    %c0_i32 = arith.constant 0 : i32
    %c0_i32_0 = arith.constant 0 : i32
    %c0_i32_1 = arith.constant 0 : i32
    return %c0_i32, %c0_i32_0 : i32, i32
  }
  func.func @transform_13(%arg0: i32) -> (i32, i32) {
    %c0_i32 = arith.constant 0 : i32
    %c0_i32_0 = arith.constant 0 : i32
    %c0_i32_1 = arith.constant 0 : i32
    return %c0_i32, %c0_i32_0 : i32, i32
  }
  func.func @transform_14(%arg0: i32) -> (i32, i32) {
    %c0_i32 = arith.constant 0 : i32
    %c0_i32_0 = arith.constant 0 : i32
    %c0_i32_1 = arith.constant 0 : i32
    return %c0_i32, %c0_i32_0 : i32, i32
  }
  func.func @transform_15(%arg0: i32) -> (i32, i32) {
    %c0_i32 = arith.constant 0 : i32
    %c0_i32_0 = arith.constant 0 : i32
    %c0_i32_1 = arith.constant 0 : i32
    return %c0_i32, %c0_i32_0 : i32, i32
  }
  func.func @transform_16(%arg0: i32) -> (i32, i32) {
    %c0_i32 = arith.constant 0 : i32
    %c0_i32_0 = arith.constant 0 : i32
    return %c0_i32, %arg0 : i32, i32
  }
}

</mosaic_0001>

<bundles_post_ra>
// kernel: neumf_forward.1
= control target key start
LH: loop header
LB: loop body
LE: loop exit
PB: predicated region body
PF: predicated region fallthrough
CT: control target
= control target key end

     0   :  { %s1863_s0 = inlined_call_operand.vmem [shape: f32[16,256], index: 0, kind: input, shape index: {}]   ;;  %s1864_s1 = inlined_call_operand.vmem [shape: f32[16,256], index: 1, kind: input, shape index: {}]   ;;  %s1865_s2 = inlined_call_operand.vmem [shape: f32[16,256], index: 2, kind: input, shape index: {}]   ;;  %s1866_s3 = inlined_call_operand.vmem [shape: f32[16,256], index: 3, kind: input, shape index: {}]   ;;  %s1867_s4 = inlined_call_operand.vmem [shape: f32[32,16], index: 4, kind: input, shape index: {}]   ;;  %s1868_s5 = inlined_call_operand.vmem [shape: f32[32,16], index: 5, kind: input, shape index: {}]   ;;  %s1869_s6 = inlined_call_operand.vmem [shape: f32[32,1], index: 6, kind: input, shape index: {}]   ;;  %s1870_s7 = inlined_call_operand.vmem [shape: f32[16,32], index: 7, kind: input, shape index: {}]   ;;  %s1871_s8 = inlined_call_operand.vmem [shape: f32[16,1], index: 8, kind: input, shape index: {}]   ;;  %s1872_s9 = inlined_call_operand.vmem [shape: f32[8,16], index: 9, kind: input, shape index: {}]   ;;  %s1873_s10 = inlined_call_operand.vmem [shape: f32[8,1], index: 10, kind: input, shape index: {}]   ;;  %s1874_s11 = inlined_call_operand.vmem [shape: f32[16,8], index: 11, kind: input, shape index: {}]   ;;  %s1875_s12 = inlined_call_operand.vmem [shape: f32[16,1], index: 12, kind: input, shape index: {}]   ;;  %s1876_s13 = inlined_call_operand.vmem [shape: f32[16,1], index: 13, kind: input, shape index: {}]   ;;  %s1877_s14 = inlined_call_operand.vmem [shape: f32[16,1], index: 14, kind: input, shape index: {}]   ;;  %s1878_s15 = inlined_call_operand.<no memory space> [shape: f32[1,1], index: 15, kind: input, shape index: {}]   ;;  %s1879_s16 = inlined_call_operand.vmem [shape: f32[1,256], index: 16, kind: output, shape index: {}]  }
   0x1   :  { %1882 = sst [smem:[#allocation9_spill]] %s1863_s0  ;;  %v21_v0 = vstv %s1878_s15 }
   0x2   :  { %1883 = sst [smem:[#allocation10_spill]] %s1879_s16  ;;  %22 = vst [vmem:[#allocation2] sm:$0x1] %v21_v0 }
   0x3   :  { %s1687_s23 = smov 0   ;;  %s1689_s24 = smov 0  }
   0x4   :  { %s1691_s25 = smov 0  }
   0x5 LB: > { %s1704_s26 = sadd.s32 1, %s1593_s25   ;;  %s35_s28 = sadd.s32 1, %s1589_s24  ;;  %s1593_s25 = sphi %s1691_s25, %s1891_s25   ;;  %s1589_s24 = sphi %s1689_s24, %s1894_s24   ;;  %s1585_s23 = sphi %s1687_s23, %s1893_s23  }
   0x6   : > { %1884 = sst [smem:[#allocation7_spill]] %s1704_s26  ;;  %s32_s27 = ssub.s32 %s1593_s25, %s1704_s26 }
   0x7   : > { %p33_p0 = scmp.eq.s32.totalorder %s32_s27, 0  ;;  %p42_p1 = scmp.ne.s32.totalorder %s1589_s24, %s1585_s23 }
   0x8   : > { %p43_p2 = scmp.eq.s32.totalorder %s1593_s25, 0  ;;  %p1417_p4 = scmp.ge.s32.totalorder %s1593_s25, 2 }
   0x9   : > { %s1713_s29 = scalar_select %p33_p0, %s1589_s24, %s35_s28  }
   0xa   : > { %p1715_p3 = por %p43_p2, %p42_p1  ;;  %460 = sbr.rel (%p1417_p4) target bundleno = 49 (0x31), region = 64 }
   0xb   : > { %1885 = sst [smem:[#allocation8_spill]] %s1713_s29 }
  0x11   : > { %463 = sbr.rel (!%p1715_p3) target bundleno = 28 (0x1c), region = 68  ;;  %s465_s0 = sand.u32 (%p1715_p3), 1, %s1589_s24  }
  0x12   : > { %s1419_s17 = sshll.u32 (%p1715_p3), %s1593_s25, 3  ;;  %s1418_s18 = sshll.u32 (%p1715_p3), %s465_s0, 4 }
  0x13   : > { %s1887_s21 = sld [smem:[#allocation9_spill]] (%p1715_p3)  ;;  %s467_s27 = scalar_lea.vmem (%p1715_p3), [#allocation3], %s1418_s18 }
  0x19   : > { %s469_s22 = scalar_lea.vmem %s1887_s21, %s1419_s17 }
  0x1a   : > { %v499_v1 = vld [vmem:[%s469_s22] sm:$0xff]  ;;  %v501_v2 = vld [vmem:[%s469_s22 + $0x10] sm:$0xff] }
  0x1b   : > { %500 = vst [vmem:[%s467_s27] sm:$0xff] %v499_v1  ;;  %502 = vst [vmem:[%s467_s27 + $0x8] sm:$0xff] %v501_v2 }
  0x1c PF: > { %508 = sbr.rel (!%p1715_p3) target bundleno = 35 (0x23), region = 106  ;;  %s510_s28 = sand.u32 (%p1715_p3), 1, %s1589_s24  }
  0x1d   : > { %s1421_s15 = sshll.u32 (%p1715_p3), %s1593_s25, 3  ;;  %s1420_s29 = sshll.u32 (%p1715_p3), %s510_s28, 4 }
  0x1e   : > { %s514_s16 = scalar_lea.vmem (%p1715_p3), %s1864_s1, %s1421_s15  ;;  %s512_s17 = scalar_lea.vmem (%p1715_p3), [#allocation4], %s1420_s29 }
  0x1f   : > { %v544_v3 = vld [vmem:[%s514_s16] sm:$0xff] (%p1715_p3)  ;;  %v546_v4 = vld [vmem:[%s514_s16 + $0x10] sm:$0xff] (%p1715_p3) }
  0x20   : > { %545 = vst [vmem:[%s512_s17] sm:$0xff] (%p1715_p3), %v544_v3  ;;  %547 = vst [vmem:[%s512_s17 + $0x8] sm:$0xff] (%p1715_p3), %v546_v4 }
  0x23 PF: > { %553 = sbr.rel (!%p1715_p3) target bundleno = 42 (0x2a), region = 144  ;;  %s555_s18 = sand.u32 (%p1715_p3), 1, %s1589_s24  }
  0x24   : > { %s1423_s19 = sshll.u32 (%p1715_p3), %s1593_s25, 3  ;;  %s1422_s20 = sshll.u32 (%p1715_p3), %s555_s18, 4 }
  0x25   : > { %s559_s27 = scalar_lea.vmem (%p1715_p3), %s1865_s2, %s1423_s19  ;;  %s557_s15 = scalar_lea.vmem (%p1715_p3), [#allocation5], %s1422_s20 }
  0x26   : > { %v589_v5 = vld [vmem:[%s559_s27] sm:$0xff] (%p1715_p3)  ;;  %v591_v6 = vld [vmem:[%s559_s27 + $0x10] sm:$0xff] (%p1715_p3) }
  0x27   : > { %590 = vst [vmem:[%s557_s15] sm:$0xff] (%p1715_p3), %v589_v5  ;;  %592 = vst [vmem:[%s557_s15 + $0x8] sm:$0xff] (%p1715_p3), %v591_v6 }
  0x2a PF: > { %598 = sbr.rel (!%p1715_p3) target bundleno = 49 (0x31), region = 182  ;;  %s600_s16 = sand.u32 (%p1715_p3), 1, %s1589_s24  }
  0x2b   : > { %s1425_s26 = sshll.u32 (%p1715_p3), %s1593_s25, 3  ;;  %s1424_s29 = sshll.u32 (%p1715_p3), %s600_s16, 4 }
  0x2c   : > { %s604_s17 = scalar_lea.vmem (%p1715_p3), %s1866_s3, %s1425_s26  ;;  %s602_s18 = scalar_lea.vmem (%p1715_p3), [#allocation6], %s1424_s29 }
  0x2d   : > { %v634_v7 = vld [vmem:[%s604_s17] sm:$0xff] (%p1715_p3)  ;;  %v636_v8 = vld [vmem:[%s604_s17 + $0x10] sm:$0xff] (%p1715_p3) }
  0x2e   : > { %635 = vst [vmem:[%s602_s18] sm:$0xff] (%p1715_p3), %v634_v7  ;;  %637 = vst [vmem:[%s602_s18 + $0x8] sm:$0xff] (%p1715_p3), %v636_v8 }
  0x31 PF: > { %p1426_p5 = scmp.ge.s32.totalorder %s1593_s25, 1  ;;  %p642_p6 = scmp.lt.s32.totalorder %s1593_s25, 3 }
  0x33   : > { %p643_p7 = pnand %p1426_p5, %p642_p6 }
  0x34   : > { %s649_s30 = sand.u32 (!%p643_p7), 1, %s1585_s23   ;;  %v744_v9 = vld [vmem:[%s1868_s5] sm:$0xff] (!%p643_p7)  ;;  %vm750_vm0 = vcmask (!%p643_p7), 130048   ;;  %v1595_v10 = vmov (!%p643_p7), 0   ;;  %v947_v17 = vld [vmem:[%s1869_s6 + $0x10] sm:$0xff] (!%p643_p7)  ;;  %v946_v18 = vld [vmem:[%s1869_s6 + $0x8] sm:$0xff] (!%p643_p7) }
  0x35   : > { %646 = sbr.rel (%p643_p7) target bundleno = 999 (0x3e7), region = 220  ;;  %s1754_s21 = sshll.u32 (!%p643_p7), %s649_s30, 4  ;;  %1475 = vmatprep.mubr.msk.f32.mxu0 (!%p643_p7), %vm750_vm0, %v744_v9  ;;  %1565 = vset.pattern.permute.xlu0 (!%p643_p7), %v1595_v10  ;;  %v945_v11 = vld [vmem:[%s1869_s6] sm:$0xff] (!%p643_p7)  ;;  %v948_v20 = vld [vmem:[%s1869_s6 + $0x18] sm:$0xff] (!%p643_p7)  ;;  %v745_v21 = vld [vmem:[%s1868_s5 + $0x8] sm:$0xff] (!%p643_p7)  ;;  %vm991_vm1 = vcmask (!%p643_p7), 261120  }
  0x36   : > { %1566 = vset.pattern.permute.xlu1 (!%p643_p7), %v1595_v10  ;;  %s672_s15 = scalar_lea.vmem (!%p643_p7), [#allocation6], %s1754_s21  ;;  %s665_s23 = scalar_lea.vmem (!%p643_p7), [#allocation5], %s1754_s21  ;;  %951 = vperm.xlu0 (!%p643_p7), %1565, %v945_v11   ;;  %v746_v22 = vld [vmem:[%s1868_s5 + $0x10] sm:$0xff] (!%p643_p7)  ;;  %v979_v23 = vld [vmem:[%s1871_s8] sm:$0xff] (!%p643_p7)  ;;  %v980_v24 = vld [vmem:[%s1871_s8 + $0x8] sm:$0xff] (!%p643_p7)  ;;  %v1596_v58 = vmov (!%p643_p7), 0.0|0.0  }
  0x37   : > { %v748_v12 = vld [vmem:[%s672_s15] sm:$0xff] (!%p643_p7)  ;;  %v749_v13 = vld [vmem:[%s672_s15 + $0x8] sm:$0xff] (!%p643_p7)  ;;  %961 = vperm.xlu1 (!%p643_p7), %1566, %v947_v17   ;;  %vm1597_vm2 = vmmov (!%p643_p7), 0   ;;  %v1598_v59 = vmov (!%p643_p7), 0.0   ;;  %vm1170_vm3 = vcmask (!%p643_p7), 64512   ;;  %s651_s18 = scalar_lea.vmem (!%p643_p7), [#allocation3], %s1754_s21 }
  0x38   : > { %v742_v14 = vld [vmem:[%s665_s23] sm:$0xff] (!%p643_p7)  ;;  %v1514_v15 = vpack.c.bf16 (!%p643_p7), %v749_v13, %v748_v12  ;;  %v743_v16 = vld [vmem:[%s665_s23 + $0x8] sm:$0xff] (!%p643_p7)  ;;  %s658_s30 = scalar_lea.vmem (!%p643_p7), [#allocation4], %s1754_s21  ;;  %s1888_s21 = sadd.s32 (!%p643_p7), 4294967295, %s1593_s25  }
  0x39   : > { %v1518_v19 = vpack.c.bf16 (!%p643_p7), %v743_v16, %v742_v14  ;;  %v747_v25 = vld [vmem:[%s1868_s5 + $0x18] sm:$0xff] (!%p643_p7)  ;;  %v738_v26 = vld [vmem:[%s1867_s4] sm:$0xff] (!%p643_p7)  ;;  %v739_v29 = vld [vmem:[%s1867_s4 + $0x8] sm:$0xff] (!%p643_p7)  ;;  %p729_p8 = scmp.lt.s32.totalorder (!%p643_p7), %s1888_s21, 1  ;;  %s1889_s19 = smov (!%p643_p7), %s1888_s21 }
  0x3a   : > { %1515 = vmatprep.subr.bf16.mxu0 (!%p643_p7), %v1514_v15  ;;  %956 = vperm.xlu0 (!%p643_p7), %1565, %v946_v18   ;;  %v1076_v27 = vld [vmem:[%s1873_s10] sm:$0xff] (!%p643_p7)  ;;  %v740_v30 = vld [vmem:[%s1867_s4 + $0x10] sm:$0xff] (!%p643_p7)  ;;  %v1159_v31 = vld [vmem:[%s1875_s12 + $0x8] sm:$0xff] (!%p643_p7)  ;;  %s1890_s27 = sld [smem:[#allocation10_spill]] (!%p643_p7) }
  0x3b   : > { %1517 = vmatpush3.bf16.msra.mxu0 (!%p643_p7), %v1514_v15  ;;  %966 = vperm.xlu1 (!%p643_p7), %1566, %v948_v20   ;;  %v1158_v28 = vld [vmem:[%s1875_s12] sm:$0xff] (!%p643_p7)  ;;  %v741_v33 = vld [vmem:[%s1867_s4 + $0x18] sm:$0xff] (!%p643_p7)  ;;  %v1253_v34 = vld [vmem:[%s1876_s13 + $0x8] sm:$0xff] (!%p643_p7) }
  0x3c   : > { %1519 = vmatprep.subr.bf16.mxu0 %v1518_v19  ;;  %v1252_v32 = vld [vmem:[%s1876_s13] sm:$0xff]  ;;  %v1267_v36 = vld [vmem:[%s1877_s14 + $0x8] sm:$0xff]  ;;  %s1896_s19 = smov (!%p729_p8, %s1889_s19), 1 }
  0x3d   : > { %v1266_v35 = vld [vmem:[%s1877_s14] sm:$0xff]  ;;  %v978_v57 = vld [vmem:[%s1870_s7 + $0x8] sm:$0xff] }
  0x3e   : > { %1476 = vmatmul.mubr.msk.f32.vlgmr.msra.gmra.mrb[0].mxu0 %vm750_vm0, %v745_v21  ;;  %983 = vperm.xlu0 %1565, %v979_v23   ;;  %v1289_v37 = vld [vmem:[#allocation2] sm:$0x1]  ;;  %v1157_v12 = vld [vmem:[%s1874_s11 + $0x8] sm:$0xff] }
  0x3f   : > { %1478 = vmatprep.mubr.msk.f32.mxu0 %vm750_vm0, %v746_v22  ;;  %1521 = vmatpush3.bf16.msra.mxu0 %v1518_v19  ;;  %v977_v38 = vld [vmem:[%s1870_s7] sm:$0xff] }
  0x40   : > { %988 = vperm.xlu1 %1566, %v980_v24   ;;  %1499 = vmatprep.mubr.msk.f32.mxu1 %vm991_vm1, %v977_v38  ;;  %v1075_v5 = vld [vmem:[%s1872_s9] sm:$0xff]  ;;  %s731_s15 = scalar_lea.vmem %s1890_s27, %s1896_s19 }
  0x41   : > { %v1156_v6 = vld [vmem:[%s1874_s11] sm:$0xff] }
  0x42   : > { %1479 = vmatmul.mubr.msk.f32.gmra.mrb[2].mxu0 %vm750_vm0, %v747_v25  ;;  %1079 = vperm.xlu0 %1565, %v1076_v27   ;;  %v733_v16 = vld [vmem:[%s651_s18 + $0x8] sm:$0xff]  ;;  %v732_v19 = vld [vmem:[%s651_s18] sm:$0xff] }
  0x43   : > { %1485 = vmatprep.mubr.msk.f32.mxu0 %vm750_vm0, %v738_v26  ;;  %v735_v17 = vld [vmem:[%s658_s30 + $0x8] sm:$0xff]  ;;  %v734_v20 = vld [vmem:[%s658_s30] sm:$0xff] }
  0x44   : > { %1162 = vperm.xlu1 %1566, %v1158_v28   ;;  %v737_v21 = vmul.f32 %v735_v17, %v733_v16  ;;  %v736_v22 = vmul.f32 %v734_v20, %v732_v19 }
  0x46   : > { %1486 = vmatmul.mubr.msk.f32.vlgmr.msra.gmra.mrb[0].mxu0 %vm750_vm0, %v739_v29  ;;  %1167 = vperm.xlu0 %1565, %v1159_v31  }
  0x47   : > { %1488 = vmatprep.mubr.msk.f32.mxu0 %vm750_vm0, %v740_v30 }
  0x48   : > { %1256 = vperm.xlu1 %1566, %v1252_v32  }
  0x4a   : > { %1489 = vmatmul.mubr.msk.f32.gmra.mrb[2].mxu0 %vm750_vm0, %v741_v33  ;;  %1261 = vperm.xlu0 %1565, %v1253_v34  }
  0x4c   : > { %1270 = vperm.xlu1 %1566, %v1266_v35   ;;  %v1295_v35 = vlaneseq }
  0x4e   : > { %1275 = vperm.xlu0 %1565, %v1267_v36   ;;  %v1296_v38 = vshrl.u32 %v1295_v35, 7 }
  0x50   : > { %1292 = vperm.xlu1 %1566, %v1289_v37  }
  0xb5   : > { %v952_v39 = vpop.permute.xlu0 %951 }
  0xb6   : > { %v962_v40 = vpop.permute.xlu1 %961 }
  0xb9   : > { %v957_v41 = vpop.permute.xlu0 %956 }
  0xba   : > { %v967_v47 = vpop.permute.xlu1 %966 }
  0xbd   : > { %v984_v62 = vpop.permute.xlu0 %983 }
  0xbf   : > { %v989_v60 = vpop.permute.xlu1 %988 }
  0xc1   : > { %v1080_v7 = vpop.permute.xlu0 %1079 }
  0xc3   : > { %v1163_v14 = vpop.permute.xlu1 %1162 }
  0xc5   : > { %v1168_v13 = vpop.permute.xlu0 %1167 }
  0xc7   : > { %v1257_v18 = vpop.permute.xlu1 %1256 }
  0xc8   : > { %v1264_v31 = vmul.f32 %v1257_v18, %v736_v22 }
  0xc9   : > { %v1262_v15 = vpop.permute.xlu0 %1261 }
  0xca   : > { %v1265_v28 = vmul.f32 %v1262_v15, %v737_v21 }
  0xcb   : > { %v1271_v29 = vpop.permute.xlu1 %1270 }
  0xcd   : > { %v1276_v26 = vpop.permute.xlu0 %1275 }
 0x119   : > { %v1487_v42 = vpop.f32.mrb[0].mxu0 }
 0x11a   : > { %v970_v43 = vadd.f32 %v1487_v42, %v957_v41  ;;  %v926_v44 = vpop.f32.mrb[1].mxu0  ;;  %v1297_v41 = vsub.s32 0, %v1296_v38 }
 0x11b   : > { %v969_v45 = vadd.f32 %v952_v39, %v926_v44 }
 0x11c   : > { %v974_v46 = vmax.f32 %v970_v43, 0.0  ;;  %v1293_v43 = vpop.permute.xlu1 %1292 }
 0x11d   : > { %v973_v48 = vmax.f32 %v969_v45, 0.0  ;;  %v1490_v49 = vpop.f32.mrb[2].mxu0  ;;  %v1298_v45 = vrot.slane %v1293_v43, %v1297_v41 }
 0x11e   : > { %v972_v50 = vadd.f32 %v1490_v49, %v967_v47  ;;  %v936_v51 = vpop.f32.mrb[3].mxu0 }
 0x11f   : > { %v971_v52 = vadd.f32 %v962_v40, %v936_v51  ;;  %v1522_v53 = vpack.c.bf16 %v974_v46, %v973_v48 }
 0x120   : > { %v976_v54 = vmax.f32 %v972_v50, 0.0 }
 0x121   : > { %v975_v55 = vmax.f32 %v971_v52, 0.0  ;;  %1523 = vmatprep.subr.bf16.mxu1 %v1522_v53 }
 0x122   : > { %1525 = vmatpush3.bf16.msra.mxu1 %v1522_v53 }
 0x123   : > { %v1526_v56 = vpack.c.bf16 %v976_v54, %v975_v55 }
 0x125   : > { %1527 = vmatprep.subr.bf16.mxu1 %v1526_v56 }
 0x126   : > { %1529 = vmatpush3.bf16.msra.mxu1 %v1526_v56 }
 0x127   : > { %1530 = vmatprep.subr.bf16.mxu1 %v1596_v58 }
 0x129   : > { %1500 = vmatmul.mubr.msk.f32.vlgmr.msra.gmra.mrb[0].mxu1 %vm991_vm1, %v978_v57 }
 0x12a   : > { %1506 = vmatprep.mubr.msk.f32.mxu1 %vm1597_vm2, %v1598_v59 }
 0x1fc   : > { %v1501_v61 = vpop.f32.mrb[0].mxu1 }
 0x1fd   : > { %v1070_v63 = vadd.f32 %v1501_v61, %v989_v60  ;;  %v1064_v0 = vpop.f32.mrb[1].mxu1 }
 0x1fe   : > { %v1065_v1 = vadd.f32 %v1064_v0, %v984_v62 }
 0x1ff   : > { %v1074_v2 = vmax.f32 %v1070_v63, 0.0 }
 0x200   : > { %v1073_v3 = vmax.f32 %v1065_v1, 0.0 }
 0x202   : > { %v1531_v4 = vpack.c.bf16 %v1074_v2, %v1073_v3 }
 0x204   : > { %1532 = vmatpush3.bf16.msra.mxu1 %v1531_v4 }
 0x207   : > { %1507 = vmatmul.mubr.msk.f32.vlgmr.msra.gmra.mrb[2].mxu1 %vm750_vm0, %v1075_v5 }
 0x208   : > { %1511 = vmatprep.mubr.msk.f32.mxu1 %vm1170_vm3, %v1156_v6 }
 0x2da   : > { %v1151_v8 = vpop.f32.mrb[2].mxu1 }
 0x2db   : > { %v1152_v9 = vadd.f32 %v1151_v8, %v1080_v7  ;;  %v1508_v10 = vpop.f32.mrb[3].mxu1 }
 0x2dd   : > { %v1155_v11 = vmax.f32 %v1152_v9, 0.0 }
 0x2df   : > { %1509 = vmatprep.subr.mxu1 %v1155_v11 }
 0x2e0   : > { %1510 = vmatpush3.msra.mxu1 %v1155_v11 }
 0x2e1   : > { %1512 = vmatmul.mubr.msk.f32.vlgmr.msra.gmra.mrb[4].mxu1 %vm1170_vm3, %v1157_v12 }
 0x3b4   : > { %v1513_v23 = vpop.f32.mrb[4].mxu1 }
 0x3b5   : > { %v1249_v24 = vadd.f32 %v1513_v23, %v1168_v13  ;;  %v1243_v25 = vpop.f32.mrb[5].mxu1 }
 0x3b6   : > { %v1244_v27 = vadd.f32 %v1243_v25, %v1163_v14 }
 0x3b7   : > { %v1279_v30 = vmul.f32 %v1276_v26, %v1249_v24 }
 0x3b8   : > { %v1278_v32 = vmul.f32 %v1271_v29, %v1244_v27 }
 0x3b9   : > { %v1281_v33 = vadd.f32 %v1279_v30, %v1265_v28 }
 0x3ba   : > { %v1280_v34 = vadd.f32 %v1278_v32, %v1264_v31 }
 0x3bc   : > { %v1282_v36 = vadd.f32 %v1281_v33, %v1280_v34 }
 0x3be   : > { %v1283_v37 = vrot.slane %v1282_v36, 4 }
 0x3c0   : > { %v1284_v39 = vadd.f32 %v1283_v37, %v1282_v36 }
 0x3c2   : > { %v1285_v40 = vrot.slane %v1284_v39, 2 }
 0x3c4   : > { %v1286_v42 = vadd.f32 %v1285_v40, %v1284_v39 }
 0x3c6   : > { %v1287_v44 = vrot.slane %v1286_v42, 1 }
 0x3c8   : > { %v1288_v46 = vadd.f32 %v1287_v44, %v1286_v42 }
 0x3ca   : > { %v1299_v47 = vadd.f32 %v1298_v45, %v1288_v46 }
 0x3cc   : > { %v1444_v48 = vmul.f32 -1.442695, %v1299_v47 }
 0x3ce   : > { %1567 = vpow2.f32 %v1444_v48 }
 0x3d8   : > { %v1568_v49 = vpop.eup %1567 }
 0x3d9   : > { %v1303_v50 = vadd.f32 1.0, %v1568_v49 }
 0x3db   : > { %1569 = vrcp.f32 %v1303_v50 }
 0x3e5   : > { %v1570_v51 = vpop.eup %1569 }
 0x3e6   : > { %1306 = vst [vmem:[%s731_s15] sm:$0x1] %v1570_v51 }
 0x3e7 PF: > { %s1891_s25 = sld [smem:[#allocation7_spill]]  ;;  %s1892_s16 = sld [smem:[#allocation8_spill]] }
 0x3e8   : > { %s1893_s23 = smov %s1589_s24 }
 0x3ed   : > { %p25_p9 = scmp.ge.s32.totalorder %s1891_s25, 4   ;;  %s1894_s24 = smov %s1892_s16 }
 0x3ef   :  { %27 = sbr.rel (!%p25_p9) target bundleno = 5 (0x5), region = 295 }

</bundles_post_ra>
